<compile_context>
chip_gen: v5e
topology: v5e:2x2
jax: 0.10.0
libtpu: 0.0.40
codegen_flags: <defaults>
</compile_context>

<pallas_src>
import functools

import jax
import jax.numpy as jnp
from jax.experimental import pallas as pl
from jax.experimental.pallas import tpu as pltpu  # noqa: F401  (TPU backend)

NORMALIZATION = ((0.485, 0.456, 0.406), (0.229, 0.224, 0.225))


# ----------------------------- Pallas kernel --------------------------------

def _fused_encoder_kernel(x_ref, w1_ref, b1_ref, w2_ref, b2_ref, feat_ref, p_ref):
    """pooled tokens -> feat_cat -> p_cat, all in VMEM, two MXU matmuls.

    x_ref  : (B, 2*pd)      pooled patch tokens, img | tac  (normalization pre-folded into w1)
    w1_ref : (2*pd, G)      block-diag [patch-embed_img(folded) ; patch-embed_tac]
    b1_ref : (1, G)
    w2_ref : (G, E)         block-diag [projector_img ; projector_tac]
    b2_ref : (1, E)
    feat_ref: (B, G)   == cat([feat_img, feat_tac], dim=1)
    p_ref   : (B, E)   == cat([p_feat_img, p_feat_tac], dim=-1)
    """
    feat = jnp.dot(x_ref[...], w1_ref[...], preferred_element_type=jnp.float32)
    feat = feat + b1_ref[...]
    feat_ref[...] = feat.astype(feat_ref.dtype)

    p = jnp.dot(feat, w2_ref[...], preferred_element_type=jnp.float32)
    p = p + b2_ref[...]
    p_ref[...] = p.astype(p_ref.dtype)


# ----------------------------- wrappers --------------------------------------

def _pool_patch_tokens(x_nchw, patch):
    """Mean over all patch positions, keeping per-patch pixel layout (c, py, px).

    NCHW -> (B, C*patch*patch).  Pure tiny XLA glue; no transposes needed since the
    stand-in weight rows are laid out channel-major to match this ordering.
    """
    B, C, H, W = x_nchw.shape
    x = x_nchw.reshape(B, C, H // patch, patch, W // patch, patch)
    x = x.mean(axis=(2, 4))                       # (B, C, patch, patch)
    return x.reshape(B, C * patch * patch)


@functools.partial(jax.jit, static_argnums=(0,))
def _encoder2_forward(patch, imag, tac, w1, b1, w2, b2):
    pooled_img = _pool_patch_tokens(imag, patch)  # (B, pd)
    pooled_tac = _pool_patch_tokens(tac, patch)   # (B, pd)
    pooled = jnp.concatenate([pooled_img, pooled_tac], axis=1)  # (B, 2*pd)

    B, K = pooled.shape
    G = w1.shape[1]
    E = w2.shape[1]

    feat_cat, p_cat = pl.pallas_call(
        _fused_encoder_kernel,
        out_shape=(
            jax.ShapeDtypeStruct((B, G), pooled.dtype),
            jax.ShapeDtypeStruct((B, E), pooled.dtype),
        ),
        in_specs=[
            pl.BlockSpec((B, K), lambda: (0, 0)),
            pl.BlockSpec((K, G), lambda: (0, 0)),
            pl.BlockSpec((1, G), lambda: (0, 0)),
            pl.BlockSpec((G, E), lambda: (0, 0)),
            pl.BlockSpec((1, E), lambda: (0, 0)),
        ],
        out_specs=(
            pl.BlockSpec((B, G), lambda: (0, 0)),
            pl.BlockSpec((B, E), lambda: (0, 0)),
        ),
    )(pooled, w1, b1.reshape(1, G), w2, b2.reshape(1, E))

    # matches Encoder2.forward return order
    return p_cat, feat_cat


class Encoder2Pallas:
    """Mirrors Encoder2(model_name, pretrain_dir, freeze, emb_dim, en_mode='cls')."""

    def __init__(self, emb_dim, gap_dim_img, gap_dim_tac, patch, in_ch, key):
        self.patch = patch
        p2 = patch * patch
        pd = p2 * in_ch
        ks = jax.random.split(key, 8)
        s = 0.02

        # backbone patch-embed stand-ins (frozen "pretrained" weights),
        # rows ordered (c, py, px) to match _pool_patch_tokens
        w_pe_img = (s * jax.random.normal(ks[0], (pd, gap_dim_img))).astype(jnp.float32)
        b_pe_img = (s * jax.random.normal(ks[1], (gap_dim_img,))).astype(jnp.float32)
        w_pe_tac = (s * jax.random.normal(ks[2], (pd, gap_dim_tac))).astype(jnp.float32)
        b_pe_tac = (s * jax.random.normal(ks[3], (gap_dim_tac,))).astype(jnp.float32)
        # projector_img / projector_tac = nn.Linear(gap_dim, emb_dim)  (en_mode == 'cls')
        w_proj_img = (s * jax.random.normal(ks[4], (gap_dim_img, emb_dim))).astype(jnp.float32)
        b_proj_img = (s * jax.random.normal(ks[5], (emb_dim,))).astype(jnp.float32)
        w_proj_tac = (s * jax.random.normal(ks[6], (gap_dim_tac, emb_dim))).astype(jnp.float32)
        b_proj_tac = (s * jax.random.normal(ks[7], (emb_dim,))).astype(jnp.float32)

        # ---- fold T.Normalize(mean, std) into the (frozen) image patch-embed ----
        mean = jnp.array(NORMALIZATION[0], dtype=jnp.float32)
        std = jnp.array(NORMALIZATION[1], dtype=jnp.float32)
        inv_rows = jnp.repeat(1.0 / std, p2)       # one entry per (c, py, px) weight row
        mean_rows = jnp.repeat(mean, p2)
        w_pe_img_f = w_pe_img * inv_rows[:, None]
        b_pe_img_f = b_pe_img - (mean_rows * inv_rows) @ w_pe_img

        # ---- stack both streams block-diagonally: one kernel, lane-denser outputs ----
        z_ig = jnp.zeros((pd, gap_dim_tac), jnp.float32)
        z_tg = jnp.zeros((pd, gap_dim_img), jnp.float32)
        self.w1 = jnp.block([[w_pe_img_f, z_ig], [z_tg, w_pe_tac]])          # (2*pd, G)
        self.b1 = jnp.concatenate([b_pe_img_f, b_pe_tac])                    # (G,)

        z_ie = jnp.zeros((gap_dim_img, emb_dim), jnp.float32)
        z_te = jnp.zeros((gap_dim_tac, emb_dim), jnp.float32)
        self.w2 = jnp.block([[w_proj_img, z_ie], [z_te, w_proj_tac]])        # (G, 2*emb)
        self.b2 = jnp.concatenate([b_proj_img, b_proj_tac])                  # (2*emb,)

        self.emb_dim = emb_dim
        self.gap_dims = (gap_dim_img, gap_dim_tac)

    def forward(self, x):
        if not isinstance(x, tuple):
            raise AttributeError(f"type of input {type(x)} is not expected")
        imag, tac = x
        return _encoder2_forward(self.patch, imag, tac, self.w1, self.b1, self.w2, self.b2)


if __name__ == "__main__":
    key = jax.random.PRNGKey(0)
    k_img, k_tac, k_params = jax.random.split(key, 3)

    B, C, H, W = 2, 3, 16, 16
    PATCH = 8
    GAP_DIM_IMG, GAP_DIM_TAC, EMB_DIM = 32, 32, 32

    imag = jax.random.uniform(k_img, (B, C, H, W), dtype=jnp.float32)
    tac = jax.random.uniform(k_tac, (B, C, H, W), dtype=jnp.float32)

    model = Encoder2Pallas(EMB_DIM, GAP_DIM_IMG, GAP_DIM_TAC, PATCH, C, k_params)
    p_cat, feat_cat = model.forward((imag, tac))
    jax.block_until_ready((p_cat, feat_cat))

    assert p_cat.shape == (B, 2 * EMB_DIM), p_cat.shape
    assert feat_cat.shape == (B, GAP_DIM_IMG + GAP_DIM_TAC), feat_cat.shape

    # lightweight reference (same folded math, plain XLA) — generous tolerance
    pooled_ref = jnp.concatenate(
        [_pool_patch_tokens(imag, PATCH), _pool_patch_tokens(tac, PATCH)], axis=1)
    feat_ref = jnp.dot(pooled_ref, model.w1, precision=jax.lax.Precision.HIGHEST) + model.b1
    p_ref = jnp.dot(feat_ref, model.w2, precision=jax.lax.Precision.HIGHEST) + model.b2
    assert bool(jnp.allclose(feat_cat, feat_ref, rtol=1e-2, atol=1e-3))
    assert bool(jnp.allclose(p_cat, p_ref, rtol=1e-2, atol=1e-3))

    print("KERNEL_OK")
</pallas_src>

<mosaic_0001>
module attributes {stable_mosaic.version = 11 : i64} {
  func.func @_fused_encoder_kernel(%arg0: memref<2x384xf32, #tpu.memory_space<vmem>>, %arg1: memref<384x64xf32, #tpu.memory_space<vmem>>, %arg2: memref<1x64xf32, #tpu.memory_space<vmem>>, %arg3: memref<64x64xf32, #tpu.memory_space<vmem>>, %arg4: memref<1x64xf32, #tpu.memory_space<vmem>>, %arg5: memref<2x64xf32, #tpu.memory_space<vmem>>, %arg6: memref<2x64xf32, #tpu.memory_space<vmem>>) attributes {dimension_semantics = [], scalar_prefetch = 0 : i64, scratch_operands = 0 : i64, tpu.core_type = #tpu.core_type<tc>} {
    %c0 = arith.constant 0 : index
    %c0_0 = arith.constant 0 : index
    %0 = vector.load %arg0[%c0, %c0_0] : memref<2x384xf32, #tpu.memory_space<vmem>>, vector<2x384xf32>
    %c0_1 = arith.constant 0 : index
    %c0_2 = arith.constant 0 : index
    %1 = vector.load %arg1[%c0_1, %c0_2] : memref<384x64xf32, #tpu.memory_space<vmem>>, vector<384x64xf32>
    %cst = arith.constant dense<0.000000e+00> : vector<2x64xf32>
    %2 = tpu.matmul %0, %1, %cst {dimension_numbers = #tpu.dot_dimension_numbers<[1], [0], [0], [1], [0, 0, 1, 1], [], []>} : vector<2x384xf32>, vector<384x64xf32>, vector<2x64xf32> -> vector<2x64xf32>
    %c0_3 = arith.constant 0 : index
    %c0_4 = arith.constant 0 : index
    %3 = vector.load %arg2[%c0_3, %c0_4] : memref<1x64xf32, #tpu.memory_space<vmem>>, vector<1x64xf32>
    %4 = vector.broadcast %3 : vector<1x64xf32> to vector<2x64xf32>
    %5 = arith.addf %2, %4 : vector<2x64xf32>
    %c0_5 = arith.constant 0 : index
    %c0_6 = arith.constant 0 : index
    %6 = vector.load %arg5[%c0_5, %c0_6] : memref<2x64xf32, #tpu.memory_space<vmem>>, vector<2x64xf32>
    tpu.vector_store %arg5[%c0_5, %c0_6], %5 {strides = array<i32>} : memref<2x64xf32, #tpu.memory_space<vmem>>, vector<2x64xf32>,
    %c0_7 = arith.constant 0 : index
    %c0_8 = arith.constant 0 : index
    %7 = vector.load %arg3[%c0_7, %c0_8] : memref<64x64xf32, #tpu.memory_space<vmem>>, vector<64x64xf32>
    %cst_9 = arith.constant dense<0.000000e+00> : vector<2x64xf32>
    %8 = tpu.matmul %5, %7, %cst_9 {dimension_numbers = #tpu.dot_dimension_numbers<[1], [0], [0], [1], [0, 0, 1, 1], [], []>} : vector<2x64xf32>, vector<64x64xf32>, vector<2x64xf32> -> vector<2x64xf32>
    %c0_10 = arith.constant 0 : index
    %c0_11 = arith.constant 0 : index
    %9 = vector.load %arg4[%c0_10, %c0_11] : memref<1x64xf32, #tpu.memory_space<vmem>>, vector<1x64xf32>
    %10 = vector.broadcast %9 : vector<1x64xf32> to vector<2x64xf32>
    %11 = arith.addf %8, %10 : vector<2x64xf32>
    %c0_12 = arith.constant 0 : index
    %c0_13 = arith.constant 0 : index
    %12 = vector.load %arg6[%c0_12, %c0_13] : memref<2x64xf32, #tpu.memory_space<vmem>>, vector<2x64xf32>
    tpu.vector_store %arg6[%c0_12, %c0_13], %11 {strides = array<i32>} : memref<2x64xf32, #tpu.memory_space<vmem>>, vector<2x64xf32>,
    return
  }
}

</mosaic_0001>

<bundles_post_ra>
// kernel: _encoder2_forward.1
= control target key start
LH: loop header
LB: loop body
LE: loop exit
PB: predicated region body
PF: predicated region fallthrough
CT: control target
= control target key end

     0   :  { %12 = vsyncpa [#allocation3], 0  ;;  %s495_s0 = inlined_call_operand.vmem [shape: f32[2,384], index: 0, kind: input, shape index: {}]   ;;  %s496_s1 = inlined_call_operand.vmem [shape: f32[384,64], index: 1, kind: input, shape index: {}]   ;;  %s497_s2 = inlined_call_operand.vmem [shape: f32[1,64], index: 2, kind: input, shape index: {}]   ;;  %s498_s3 = inlined_call_operand.vmem [shape: f32[64,64], index: 3, kind: input, shape index: {}]   ;;  %s499_s4 = inlined_call_operand.vmem [shape: f32[1,64], index: 4, kind: input, shape index: {}]   ;;  %s500_s5 = inlined_call_operand.hbm [shape: f32[2,64], index: 5, kind: output, shape index: {0}]   ;;  %s501_s6 = inlined_call_operand.hbm [shape: f32[2,64], index: 6, kind: output, shape index: {1}]  }
   0x1   :  { %v72_v0 = vld [vmem:[%s496_s1 + $0x178] sm:$0xff]  ;;  %v71_v2 = vld [vmem:[%s496_s1 + $0x170] sm:$0xff]  ;;  %v70_v5 = vld [vmem:[%s496_s1 + $0x168] sm:$0xff] }
   0x2   :  { %v40_v1 = vld [vmem:[%s496_s1 + $0x78] sm:$0xff]  ;;  %125 = vmatpush.msra.mxu2 %v72_v0  ;;  %v39_v3 = vld [vmem:[%s496_s1 + $0x70] sm:$0xff]  ;;  %v38_v6 = vld [vmem:[%s496_s1 + $0x68] sm:$0xff] }
   0x3   :  { %85 = vmatpush.msra.mxu0 %v40_v1  ;;  %v56_v4 = vld [vmem:[%s496_s1 + $0xf8] sm:$0xff]  ;;  %v55_v7 = vld [vmem:[%s496_s1 + $0xf0] sm:$0xff]  ;;  %v54_v8 = vld [vmem:[%s496_s1 + $0xe8] sm:$0xff] }
   0x4   :  { %105 = vmatpush.msra.mxu1 %v56_v4  ;;  %126 = vmatpush.msra.mxu2 %v71_v2  ;;  %v69_v9 = vld [vmem:[%s496_s1 + $0x160] sm:$0xff]  ;;  %v68_v12 = vld [vmem:[%s496_s1 + $0x158] sm:$0xff]  ;;  %v67_v15 = vld [vmem:[%s496_s1 + $0x150] sm:$0xff] }
   0x5   :  { %86 = vmatpush.msra.mxu0 %v39_v3  ;;  %v37_v10 = vld [vmem:[%s496_s1 + $0x60] sm:$0xff]  ;;  %v36_v13 = vld [vmem:[%s496_s1 + $0x58] sm:$0xff]  ;;  %v35_v16 = vld [vmem:[%s496_s1 + $0x50] sm:$0xff] }
   0x6   :  { %106 = vmatpush.msra.mxu1 %v55_v7  ;;  %127 = vmatpush.msra.mxu2 %v70_v5  ;;  %v53_v11 = vld [vmem:[%s496_s1 + $0xe0] sm:$0xff]  ;;  %v52_v14 = vld [vmem:[%s496_s1 + $0xd8] sm:$0xff]  ;;  %v51_v17 = vld [vmem:[%s496_s1 + $0xd0] sm:$0xff] }
   0x7   :  { %87 = vmatpush.msra.mxu0 %v38_v6  ;;  %v66_v18 = vld [vmem:[%s496_s1 + $0x148] sm:$0xff]  ;;  %v65_v21 = vld [vmem:[%s496_s1 + $0x140] sm:$0xff]  ;;  %v64_v24 = vld [vmem:[%s496_s1 + $0x138] sm:$0xff] }
   0x8   :  { %107 = vmatpush.msra.mxu1 %v54_v8  ;;  %128 = vmatpush.msra.mxu2 %v69_v9  ;;  %v34_v19 = vld [vmem:[%s496_s1 + $0x48] sm:$0xff]  ;;  %v33_v22 = vld [vmem:[%s496_s1 + $0x40] sm:$0xff]  ;;  %v32_v25 = vld [vmem:[%s496_s1 + $0x38] sm:$0xff] }
   0x9   :  { %88 = vmatpush.msra.mxu0 %v37_v10  ;;  %v50_v20 = vld [vmem:[%s496_s1 + $0xc8] sm:$0xff]  ;;  %v49_v23 = vld [vmem:[%s496_s1 + $0xc0] sm:$0xff]  ;;  %v63_v26 = vld [vmem:[%s496_s1 + $0x130] sm:$0xff] }
   0xa   :  { %108 = vmatpush.msra.mxu1 %v53_v11  ;;  %129 = vmatpush.msra.mxu2 %v68_v12  ;;  %v48_v27 = vld [vmem:[%s496_s1 + $0xb8] sm:$0xff]  ;;  %v24_v28 = vld [vmem:[%s495_s0] sm:$0x3f]  ;;  %v31_v29 = vld [vmem:[%s496_s1 + $0x30] sm:$0xff] }
   0xb   :  { %89 = vmatpush.msra.mxu0 %v36_v13  ;;  %v62_v30 = vld [vmem:[%s496_s1 + $0x128] sm:$0xff]  ;;  %78 = vst [vmem:[#allocation1] ss:$4 sm:$0xff] %v24_v28  ;;  %v154_v31 = vld [vmem:[%s498_s3 + $0x38] sm:$0xff]  ;;  %v47_v32 = vld [vmem:[%s496_s1 + $0xb0] sm:$0xff] }
   0xc   :  { %109 = vmatpush.msra.mxu1 %v52_v14  ;;  %130 = vmatpush.msra.mxu2 %v67_v15  ;;  %v153_v33 = vld [vmem:[%s498_s3 + $0x30] sm:$0xff]  ;;  %v30_v34 = vld [vmem:[%s496_s1 + $0x28] sm:$0xff] }
   0xd   :  { %90 = vmatpush.msra.mxu0 %v35_v16  ;;  %171 = vmatpush.msra.mxu3 %v154_v31 }
   0xe   :  { %110 = vmatpush.msra.mxu1 %v51_v17  ;;  %131 = vmatpush.msra.mxu2 %v66_v18 }
   0xf   :  { %91 = vmatpush.msra.mxu0 %v34_v19 }
  0x10   :  { %111 = vmatpush.msra.mxu1 %v50_v20  ;;  %132 = vmatpush.msra.mxu2 %v65_v21 }
  0x11   :  { %92 = vmatpush.msra.mxu0 %v33_v22 }
  0x12   :  { %112 = vmatpush.msra.mxu1 %v49_v23  ;;  %133 = vmatpush.msra.mxu2 %v64_v24 }
  0x13   :  { %93 = vmatpush.msra.mxu0 %v32_v25 }
  0x14   :  { %113 = vmatpush.msra.mxu1 %v48_v27 }
  0x15   :  { %13 = vsyncpa [#allocation5], 0  ;;  %134 = vmatpush.msra.mxu2 %v63_v26  ;;  %94 = vmatpush.msra.mxu0 %v31_v29  ;;  %v46_v35 = vld [vmem:[%s496_s1 + $0xa8] sm:$0xff]  ;;  %v61_v37 = vld [vmem:[%s496_s1 + $0x120] sm:$0xff]  ;;  %vm159_vm0 = vcmask 523264   ;;  %vm145_vm1 = vcmask 517120  }
  0x16   :  { %v152_v36 = vld [vmem:[%s498_s3 + $0x28] sm:$0xff]  ;;  %114 = vmatpush.msra.mxu1 %v47_v32  ;;  %v29_v38 = vld [vmem:[%s496_s1 + $0x20] sm:$0xff]  ;;  %172 = vmatpush.msra.mxu3 %v153_v33  ;;  %v60_v41 = vld [vmem:[%s496_s1 + $0x118] sm:$0xff]  ;;  %s273_s14 = smov [#allocation2]   ;;  %s191_s16 = sshll.u32 %s500_s5, 4  ;;  %s192_s16 = int_to_ptr.hbm [resolvable:$true] %s191_s16 }
  0x17   :  { %135 = vmatpush.msra.mxu2 %v62_v30  ;;  %95 = vmatpush.msra.mxu0 %v30_v34  ;;  %v45_v39 = vld [vmem:[%s496_s1 + $0xa0] sm:$0xff]  ;;  %v28_v42 = vld [vmem:[%s496_s1 + $0x18] sm:$0xff]  ;;  %v59_v44 = vld [vmem:[%s496_s1 + $0x110] sm:$0xff]  ;;  %s189_s0 = sshll.u32 %s273_s14, 4  ;;  %s274_s18 = smov [#allocation4]   ;;  %s190_s0 = int_to_ptr.vmem [resolvable:$true] %s189_s0 }
  0x18   :  { %v151_v40 = vld [vmem:[%s498_s3 + $0x20] sm:$0xff]  ;;  %115 = vmatpush.msra.mxu1 %v46_v35  ;;  %173 = vmatpush.msra.mxu3 %v152_v36  ;;  %v44_v43 = vld [vmem:[%s496_s1 + $0x98] sm:$0xff]  ;;  %v27_v45 = vld [vmem:[%s496_s1 + $0x10] sm:$0xff]  ;;  %s200_s19 = sshll.u32 %s274_s18, 4  ;;  %s202_s22 = sshll.u32 %s501_s6, 4  ;;  %s201_s19 = int_to_ptr.vmem [resolvable:$true] %s200_s19  ;;  %s203_s22 = int_to_ptr.hbm [resolvable:$true] %s202_s22 }
  0x19   :  { %136 = vmatpush.msra.mxu2 %v61_v37  ;;  %96 = vmatpush.msra.mxu0 %v29_v38  ;;  %v43_v46 = vld [vmem:[%s496_s1 + $0x90] sm:$0xff]  ;;  %v58_v47 = vld [vmem:[%s496_s1 + $0x108] sm:$0xff]  ;;  %v57_v50 = vld [vmem:[%s496_s1 + $0x100] sm:$0xff] }
  0x1a   :  { %116 = vmatpush.msra.mxu1 %v45_v39  ;;  %174 = vmatpush.msra.mxu3 %v151_v40  ;;  %v26_v48 = vld [vmem:[%s496_s1 + $0x8] sm:$0xff]  ;;  %v25_v51 = vld [vmem:[%s496_s1] sm:$0xff]  ;;  %v81_v52 = vld.sshfl [vmem:[#allocation1 + $0x10] sm:$0xff pattern:$0x73625140] }
  0x1b   :  { %137 = vmatpush.msra.mxu2 %v60_v41  ;;  %97 = vmatpush.msra.mxu0 %v28_v42  ;;  %v42_v49 = vld [vmem:[%s496_s1 + $0x88] sm:$0xff]  ;;  %v79_v53 = vld.sshfl [vmem:[#allocation1] sm:$0xff pattern:$0x73625140]  ;;  %v150_v56 = vld [vmem:[%s498_s3 + $0x18] sm:$0xff] }
  0x1c   :  { %117 = vmatpush.msra.mxu1 %v44_v43  ;;  %v41_v54 = vld [vmem:[%s496_s1 + $0x80] sm:$0xff]  ;;  %v80_v55 = vld.sshfl [vmem:[#allocation1 + $0x8] sm:$0xff pattern:$0x73625140]  ;;  %175 = vmatpush.msra.mxu3 %v150_v56  ;;  %v149_v57 = vld [vmem:[%s498_s3 + $0x10] sm:$0xff] }
  0x1d   :  { %138 = vmatpush.msra.mxu2 %v59_v44  ;;  %98 = vmatpush.msra.mxu0 %v27_v45  ;;  %v148_v58 = vld [vmem:[%s498_s3 + $0x8] sm:$0xff]  ;;  %v147_v59 = vld [vmem:[%s498_s3] sm:$0xff] }
  0x1e   :  { %118 = vmatpush.msra.mxu1 %v43_v46  ;;  %176 = vmatpush.msra.mxu3 %v149_v57  ;;  %v219_v60 = vld [vmem:[%s497_s2] ss:$0 sm:$0xff] }
  0x1f   :  { %139 = vmatpush.msra.mxu2 %v58_v47  ;;  %99 = vmatpush.msra.mxu0 %v26_v48  ;;  %v220_v3 = vld [vmem:[%s499_s4] ss:$0 sm:$0xff] }
  0x20   :  { %119 = vmatpush.msra.mxu1 %v42_v49  ;;  %177 = vmatpush.msra.mxu3 %v148_v58 }
  0x21   :  { %140 = vmatpush.msra.mxu2 %v57_v50  ;;  %100 = vmatpush.msra.mxu0 %v25_v51 }
  0x22   :  { %141 = vmatmul.f32.vlgmr.msra.gmra.mxu2 %v81_v52  ;;  %101 = vmatmul.f32.vlgmr.msra.gmra.mxu0 %v79_v53 }
  0x23   :  { %120 = vmatpush.msra.mxu1 %v41_v54  ;;  %178 = vmatpush.msra.mxu3 %v147_v59 }
  0x24   :  { %121 = vmatmul.f32.vlgmr.msra.gmra.mxu1 %v80_v55 }
  0x9f   :  { %v102_v61 = vpop.f32.mrf.mxu0 }
  0xa0   :  { %v103_v62 = vadd.f32 %v219_v60, %v102_v61 }
  0xa1   :  { %v122_v63 = vpop.f32.mrf.mxu1 }
  0xa2   :  { %v123_v0 = vadd.f32 %v122_v63, %v103_v62 }
  0xa5   :  { %v142_v1 = vpop.f32.mrf.mxu2 }
  0xa6   :  { %v143_v2 = vadd.f32 %v142_v1, %v123_v0 }
  0xa8   :  { %216 = vmatmul.msk.f32.vlgmr.msra.gmra.mxu3 %vm159_vm0, %v143_v2  ;;  %146 = vst.msk [vmem:[#allocation2] sm:$0x3] %vm145_vm1, %v143_v2 }
  0xa9   :  { %194 = dma.vmem_to_hbm [thread:$0]  %s190_s0, 32, %s192_s16, [#allocation3]  }
 0x12b   :  { %v180_v4 = vpop.f32.mrf.mxu3 }
 0x12c   :  { %v181_v5 = vadd.f32 %v220_v3, %v180_v4 }
 0x12e   :  { %183 = vst.msk [vmem:[#allocation4] sm:$0x3] %vm145_vm1, %v181_v5 }
 0x12f   :  { %205 = dma.vmem_to_hbm [thread:$0]  %s201_s19, 32, %s203_s22, [#allocation5]  }
 0x130   :  { %269 = dma.done.wait [#allocation3], 32  }
 0x131   :  { %270 = vsyncadd [#allocation3], 4294967264 }
 0x132   :  { %271 = dma.done.wait [#allocation5], 32  }
 0x133   :  { %272 = vsyncadd [#allocation5], 4294967264 }
 0x134   :  { %214 = vsyncpa [#allocation3], 1 }
 0x135   :  { %215 = vsyncpa [#allocation5], 1 }

</bundles_post_ra>
